<compile_context>
chip_gen: v5e
topology: v5e:2x2
jax: 0.10.0
libtpu: 0.0.40
codegen_flags: <defaults>
</compile_context>

<pallas_src>
import functools

import jax
import jax.numpy as jnp
from jax.experimental import pallas as pl
from jax.experimental.pallas import tpu as pltpu

# Layer sizes from the module's __init__.
DIMS = [500, 100, 100, 100, 50, 1]
PAD = 128  # padded hidden width (lane-aligned)


def _round_up(x, m):
    return ((x + m - 1) // m) * m


def fcn_kernel(x_ref,          # (TB, 500)  bf16
               w1_ref,         # (500, 128) bf16
               w2_ref,         # (128, 128) bf16
               w3_ref,         # (128, 128) bf16
               w4_ref,         # (128, 128) bf16
               w5_ref,         # (1, 128)   f32  (row vector of the (50,1) weight)
               bias_ref,       # (8, 128)   f32  rows 0..3 = b1..b4 (padded), [4,0] = b5
               o_ref):         # (TB, 1)    f32
    f32 = jnp.float32
    bf16 = jnp.bfloat16

    x = x_ref[...]              # bf16
    b = bias_ref[...]           # f32, loaded once

    # Linear(500,100)+ReLU  (padded to 128 outputs; pad columns/bias are zero)
    h = jnp.dot(x, w1_ref[...], preferred_element_type=f32) + b[0:1, :]
    h = jnp.maximum(h, 0.0)
    # Linear(100,100)+ReLU
    h = jnp.dot(h.astype(bf16), w2_ref[...], preferred_element_type=f32) + b[1:2, :]
    h = jnp.maximum(h, 0.0)
    # Linear(100,100)+ReLU
    h = jnp.dot(h.astype(bf16), w3_ref[...], preferred_element_type=f32) + b[2:3, :]
    h = jnp.maximum(h, 0.0)
    # Linear(100,50)+ReLU
    h = jnp.dot(h.astype(bf16), w4_ref[...], preferred_element_type=f32) + b[3:4, :]
    h = jnp.maximum(h, 0.0)

    # Linear(50,1): N=1, so do it on the VPU as a multiply + lane reduction
    # instead of a near-empty MXU matmul.  Padded lanes of h and w5 are zero.
    w5_row = w5_ref[...]                                      # (1, 128) f32
    out = jnp.sum(h * w5_row, axis=-1, keepdims=True) + b[4:5, 0:1]   # (TB, 1)

    o_ref[...] = out.astype(o_ref.dtype)


def prepare_params(params):
    """Pad hidden dims to 128, cast MXU weights to bf16, pack biases into one tile.

    `params` is a list of (w, b) with w shaped (in, out) and b shaped (1, out),
    matching `h = x @ w + b` (same semantics as PyTorch nn.Linear).
    """
    (w1, b1), (w2, b2), (w3, b3), (w4, b4), (w5, b5) = params

    def pad_w(w, kin, kout):
        return jnp.pad(w, ((0, kin - w.shape[0]), (0, kout - w.shape[1])))

    w1p = pad_w(w1, DIMS[0], PAD).astype(jnp.bfloat16)   # (500, 128)
    w2p = pad_w(w2, PAD, PAD).astype(jnp.bfloat16)       # (128, 128)
    w3p = pad_w(w3, PAD, PAD).astype(jnp.bfloat16)       # (128, 128)
    w4p = pad_w(w4, PAD, PAD).astype(jnp.bfloat16)       # (128, 128)

    # Final layer weight as a (1, 128) f32 row vector (used by the VPU reduce).
    w5_row = jnp.pad(w5[:, 0][None, :], ((0, 0), (0, PAD - w5.shape[0])))
    w5_row = w5_row.astype(jnp.float32)

    # Pack all biases into one (8, 128) f32 VMEM tile.
    bias = jnp.zeros((8, PAD), jnp.float32)
    bias = bias.at[0, : b1.shape[1]].set(b1.reshape(-1).astype(jnp.float32))
    bias = bias.at[1, : b2.shape[1]].set(b2.reshape(-1).astype(jnp.float32))
    bias = bias.at[2, : b3.shape[1]].set(b3.reshape(-1).astype(jnp.float32))
    bias = bias.at[3, : b4.shape[1]].set(b4.reshape(-1).astype(jnp.float32))
    bias = bias.at[4, 0].set(b5.reshape(-1)[0].astype(jnp.float32))

    return (w1p, w2p, w3p, w4p, w5_row, bias)


@functools.partial(jax.jit, static_argnames=("tile_b",))
def fcn_forward(x, prepped, tile_b=512):
    w1p, w2p, w3p, w4p, w5_row, bias = prepped
    B, d_in = x.shape
    assert d_in == DIMS[0]

    # Effective batch tile: large (fills the MXU M dim) but never larger than the
    # (128-rounded) batch, so tiny demo batches don't do 512x wasted work.
    tb = min(tile_b, _round_up(B, 128))
    b_pad = _round_up(B, tb)
    num_tiles = b_pad // tb

    xb = x.astype(jnp.bfloat16)
    if b_pad != B:
        xb = jnp.pad(xb, ((0, b_pad - B), (0, 0)))

    def full_spec(shape):
        nd = len(shape)
        return pl.BlockSpec(shape, lambda i, _nd=nd: (0,) * _nd)

    in_specs = [
        pl.BlockSpec((tb, DIMS[0]), lambda i: (i, 0)),   # x tile
        full_spec(w1p.shape),
        full_spec(w2p.shape),
        full_spec(w3p.shape),
        full_spec(w4p.shape),
        full_spec(w5_row.shape),
        full_spec(bias.shape),
    ]
    out_spec = pl.BlockSpec((tb, 1), lambda i: (i, 0))

    out = pl.pallas_call(
        fcn_kernel,
        out_shape=jax.ShapeDtypeStruct((b_pad, 1), jnp.float32),
        grid_spec=pltpu.PrefetchScalarGridSpec(
            num_scalar_prefetch=0,
            grid=(num_tiles,),
            in_specs=in_specs,
            out_specs=out_spec,
        ),
        compiler_params=pltpu.CompilerParams(
            dimension_semantics=("parallel",),           # megacore-friendly on v7x
            vmem_limit_bytes=32 * 1024 * 1024,           # > v5e's 16 MiB default
        ),
    )(xb, w1p, w2p, w3p, w4p, w5_row, bias)

    return out[:B]


def init_params(key):
    """Deterministic init mimicking PyTorch's U(-1/sqrt(fan_in), 1/sqrt(fan_in))."""
    params = []
    for d_in, d_out in zip(DIMS[:-1], DIMS[1:]):
        key, kw, kb = jax.random.split(key, 3)
        bound = 1.0 / jnp.sqrt(jnp.float32(d_in))
        w = jax.random.uniform(kw, (d_in, d_out), jnp.float32, -bound, bound)
        b = jax.random.uniform(kb, (1, d_out), jnp.float32, -bound, bound)
        params.append((w, b))
    return params


def reference_forward(x, params):
    """Reference with the same numerics as the kernel (bf16 matmuls, f32 accum)."""
    h = x
    for (w, b) in params[:-1]:
        h = jnp.dot(h.astype(jnp.bfloat16), w.astype(jnp.bfloat16),
                    preferred_element_type=jnp.float32) + b
        h = jnp.maximum(h, 0.0)
    w5, b5 = params[-1]
    return jnp.sum(h * w5[:, 0][None, :], axis=-1, keepdims=True) + b5


if __name__ == "__main__":
    key = jax.random.PRNGKey(0)
    key, kx = jax.random.split(key)

    B = 8  # small demo batch; wrapper pads internally to the batch tile
    x = jax.random.normal(kx, (B, DIMS[0]), jnp.float32)
    params = init_params(key)
    prepped = prepare_params(params)

    out = fcn_forward(x, prepped)
    out = jax.block_until_ready(out)

    ref = reference_forward(x, params)
    assert out.shape == (B, 1)
    assert jnp.allclose(out, ref, atol=1e-2, rtol=1e-2), "mismatch vs reference"

    print("KERNEL_OK")
</pallas_src>

<mosaic_0001>
module attributes {stable_mosaic.version = 11 : i64} {
  func.func @fcn_kernel(%arg0: i32, %arg1: memref<128x500xbf16, #tpu.memory_space<vmem>>, %arg2: memref<500x128xbf16, #tpu.memory_space<vmem>>, %arg3: memref<128x128xbf16, #tpu.memory_space<vmem>>, %arg4: memref<128x128xbf16, #tpu.memory_space<vmem>>, %arg5: memref<128x128xbf16, #tpu.memory_space<vmem>>, %arg6: memref<1x128xf32, #tpu.memory_space<vmem>>, %arg7: memref<8x128xf32, #tpu.memory_space<vmem>>, %arg8: memref<128x1xf32, #tpu.memory_space<vmem>>) attributes {dimension_semantics = [#tpu.dimension_semantics<parallel>], iteration_bounds = array<i64: 1>, scalar_prefetch = 0 : i64, scratch_operands = 0 : i64, tpu.core_type = #tpu.core_type<tc>, window_params = [{transform_indices = @transform_0, window_bounds = array<i64: 128, 500>}, {pipeline_mode = #tpu.pipeline_mode<synchronous>, transform_indices = @transform_1, window_bounds = array<i64: 500, 128>}, {pipeline_mode = #tpu.pipeline_mode<synchronous>, transform_indices = @transform_2, window_bounds = array<i64: 128, 128>}, {pipeline_mode = #tpu.pipeline_mode<synchronous>, transform_indices = @transform_3, window_bounds = array<i64: 128, 128>}, {pipeline_mode = #tpu.pipeline_mode<synchronous>, transform_indices = @transform_4, window_bounds = array<i64: 128, 128>}, {pipeline_mode = #tpu.pipeline_mode<synchronous>, transform_indices = @transform_5, window_bounds = array<i64: 1, 128>}, {pipeline_mode = #tpu.pipeline_mode<synchronous>, transform_indices = @transform_6, window_bounds = array<i64: 8, 128>}, {transform_indices = @transform_7, window_bounds = array<i64: 128, 1>}]} {
    %c0 = arith.constant 0 : index
    %c0_0 = arith.constant 0 : index
    %0 = vector.load %arg1[%c0, %c0_0] : memref<128x500xbf16, #tpu.memory_space<vmem>>, vector<128x500xbf16>
    %c0_1 = arith.constant 0 : index
    %c0_2 = arith.constant 0 : index
    %1 = vector.load %arg7[%c0_1, %c0_2] : memref<8x128xf32, #tpu.memory_space<vmem>>, vector<8x128xf32>
    %c0_3 = arith.constant 0 : index
    %c0_4 = arith.constant 0 : index
    %2 = vector.load %arg2[%c0_3, %c0_4] : memref<500x128xbf16, #tpu.memory_space<vmem>>, vector<500x128xbf16>
    %cst = arith.constant dense<0.000000e+00> : vector<128x128xf32>
    %3 = tpu.matmul %0, %2, %cst {dimension_numbers = #tpu.dot_dimension_numbers<[1], [0], [0], [1], [0, 0, 1, 1], [], []>} : vector<128x500xbf16>, vector<500x128xbf16>, vector<128x128xf32> -> vector<128x128xf32>
    %4 = vector.extract_strided_slice %1 {offsets = [0, 0], sizes = [1, 128], strides = [1, 1]} : vector<8x128xf32> to vector<1x128xf32>
    %5 = vector.broadcast %4 : vector<1x128xf32> to vector<128x128xf32>
    %6 = arith.addf %3, %5 : vector<128x128xf32>
    %cst_5 = arith.constant 0.000000e+00 : f32
    %7 = vector.broadcast %cst_5 : f32 to vector<128x128xf32>
    %8 = arith.maximumf %6, %7 : vector<128x128xf32>
    %9 = arith.truncf %8 : vector<128x128xf32> to vector<128x128xbf16>
    %c0_6 = arith.constant 0 : index
    %c0_7 = arith.constant 0 : index
    %10 = vector.load %arg3[%c0_6, %c0_7] : memref<128x128xbf16, #tpu.memory_space<vmem>>, vector<128x128xbf16>
    %cst_8 = arith.constant dense<0.000000e+00> : vector<128x128xf32>
    %11 = tpu.matmul %9, %10, %cst_8 {dimension_numbers = #tpu.dot_dimension_numbers<[1], [0], [0], [1], [0, 0, 1, 1], [], []>} : vector<128x128xbf16>, vector<128x128xbf16>, vector<128x128xf32> -> vector<128x128xf32>
    %12 = vector.extract_strided_slice %1 {offsets = [1, 0], sizes = [1, 128], strides = [1, 1]} : vector<8x128xf32> to vector<1x128xf32>
    %13 = vector.broadcast %12 : vector<1x128xf32> to vector<128x128xf32>
    %14 = arith.addf %11, %13 : vector<128x128xf32>
    %cst_9 = arith.constant 0.000000e+00 : f32
    %15 = vector.broadcast %cst_9 : f32 to vector<128x128xf32>
    %16 = arith.maximumf %14, %15 : vector<128x128xf32>
    %17 = arith.truncf %16 : vector<128x128xf32> to vector<128x128xbf16>
    %c0_10 = arith.constant 0 : index
    %c0_11 = arith.constant 0 : index
    %18 = vector.load %arg4[%c0_10, %c0_11] : memref<128x128xbf16, #tpu.memory_space<vmem>>, vector<128x128xbf16>
    %cst_12 = arith.constant dense<0.000000e+00> : vector<128x128xf32>
    %19 = tpu.matmul %17, %18, %cst_12 {dimension_numbers = #tpu.dot_dimension_numbers<[1], [0], [0], [1], [0, 0, 1, 1], [], []>} : vector<128x128xbf16>, vector<128x128xbf16>, vector<128x128xf32> -> vector<128x128xf32>
    %20 = vector.extract_strided_slice %1 {offsets = [2, 0], sizes = [1, 128], strides = [1, 1]} : vector<8x128xf32> to vector<1x128xf32>
    %21 = vector.broadcast %20 : vector<1x128xf32> to vector<128x128xf32>
    %22 = arith.addf %19, %21 : vector<128x128xf32>
    %cst_13 = arith.constant 0.000000e+00 : f32
    %23 = vector.broadcast %cst_13 : f32 to vector<128x128xf32>
    %24 = arith.maximumf %22, %23 : vector<128x128xf32>
    %25 = arith.truncf %24 : vector<128x128xf32> to vector<128x128xbf16>
    %c0_14 = arith.constant 0 : index
    %c0_15 = arith.constant 0 : index
    %26 = vector.load %arg5[%c0_14, %c0_15] : memref<128x128xbf16, #tpu.memory_space<vmem>>, vector<128x128xbf16>
    %cst_16 = arith.constant dense<0.000000e+00> : vector<128x128xf32>
    %27 = tpu.matmul %25, %26, %cst_16 {dimension_numbers = #tpu.dot_dimension_numbers<[1], [0], [0], [1], [0, 0, 1, 1], [], []>} : vector<128x128xbf16>, vector<128x128xbf16>, vector<128x128xf32> -> vector<128x128xf32>
    %28 = vector.extract_strided_slice %1 {offsets = [3, 0], sizes = [1, 128], strides = [1, 1]} : vector<8x128xf32> to vector<1x128xf32>
    %29 = vector.broadcast %28 : vector<1x128xf32> to vector<128x128xf32>
    %30 = arith.addf %27, %29 : vector<128x128xf32>
    %cst_17 = arith.constant 0.000000e+00 : f32
    %31 = vector.broadcast %cst_17 : f32 to vector<128x128xf32>
    %32 = arith.maximumf %30, %31 : vector<128x128xf32>
    %c0_18 = arith.constant 0 : index
    %c0_19 = arith.constant 0 : index
    %33 = vector.load %arg6[%c0_18, %c0_19] : memref<1x128xf32, #tpu.memory_space<vmem>>, vector<1x128xf32>
    %34 = vector.broadcast %33 : vector<1x128xf32> to vector<128x128xf32>
    %35 = arith.mulf %32, %34 : vector<128x128xf32>
    %cst_20 = arith.constant dense<0.000000e+00> : vector<128xf32>
    %36 = vector.multi_reduction <add>, %35, %cst_20 [1] : vector<128x128xf32> to vector<128xf32>
    %37 = vector.shape_cast %36 : vector<128xf32> to vector<128x1xf32>
    %38 = vector.extract_strided_slice %1 {offsets = [4, 0], sizes = [1, 1], strides = [1, 1]} : vector<8x128xf32> to vector<1x1xf32>
    %39 = vector.broadcast %38 : vector<1x1xf32> to vector<128x1xf32>
    %40 = arith.addf %37, %39 : vector<128x1xf32>
    %c0_21 = arith.constant 0 : index
    %c0_22 = arith.constant 0 : index
    %41 = vector.load %arg8[%c0_21, %c0_22] : memref<128x1xf32, #tpu.memory_space<vmem>>, vector<128x1xf32>
    tpu.vector_store %arg8[%c0_21, %c0_22], %40 {strides = array<i32>} : memref<128x1xf32, #tpu.memory_space<vmem>>, vector<128x1xf32>,
    return
  }
  func.func @transform_0(%arg0: i32) -> (i32, i32) {
    %c0_i32 = arith.constant 0 : i32
    %c0_i32_0 = arith.constant 0 : i32
    return %arg0, %c0_i32 : i32, i32
  }
  func.func @transform_1(%arg0: i32) -> (i32, i32) {
    %c0_i32 = arith.constant 0 : i32
    %c0_i32_0 = arith.constant 0 : i32
    %c0_i32_1 = arith.constant 0 : i32
    return %c0_i32, %c0_i32_0 : i32, i32
  }
  func.func @transform_2(%arg0: i32) -> (i32, i32) {
    %c0_i32 = arith.constant 0 : i32
    %c0_i32_0 = arith.constant 0 : i32
    %c0_i32_1 = arith.constant 0 : i32
    return %c0_i32, %c0_i32_0 : i32, i32
  }
  func.func @transform_3(%arg0: i32) -> (i32, i32) {
    %c0_i32 = arith.constant 0 : i32
    %c0_i32_0 = arith.constant 0 : i32
    %c0_i32_1 = arith.constant 0 : i32
    return %c0_i32, %c0_i32_0 : i32, i32
  }
  func.func @transform_4(%arg0: i32) -> (i32, i32) {
    %c0_i32 = arith.constant 0 : i32
    %c0_i32_0 = arith.constant 0 : i32
    %c0_i32_1 = arith.constant 0 : i32
    return %c0_i32, %c0_i32_0 : i32, i32
  }
  func.func @transform_5(%arg0: i32) -> (i32, i32) {
    %c0_i32 = arith.constant 0 : i32
    %c0_i32_0 = arith.constant 0 : i32
    %c0_i32_1 = arith.constant 0 : i32
    return %c0_i32, %c0_i32_0 : i32, i32
  }
  func.func @transform_6(%arg0: i32) -> (i32, i32) {
    %c0_i32 = arith.constant 0 : i32
    %c0_i32_0 = arith.constant 0 : i32
    %c0_i32_1 = arith.constant 0 : i32
    return %c0_i32, %c0_i32_0 : i32, i32
  }
  func.func @transform_7(%arg0: i32) -> (i32, i32) {
    %c0_i32 = arith.constant 0 : i32
    %c0_i32_0 = arith.constant 0 : i32
    return %arg0, %c0_i32 : i32, i32
  }
}

</mosaic_0001>

<bundles_post_ra>
// kernel: fcn_forward.1
= control target key start
LH: loop header
LB: loop body
LE: loop exit
PB: predicated region body
PF: predicated region fallthrough
CT: control target
= control target key end

     0   :  { %12 = vsyncpa [#allocation3], 0  ;;  %s2423_s0 = inlined_call_operand.vmem [shape: bf16[128,500], index: 0, kind: input, shape index: {}]   ;;  %s2424_s1 = inlined_call_operand.vmem [shape: bf16[500,128], index: 1, kind: input, shape index: {}]   ;;  %s2425_s2 = inlined_call_operand.vmem [shape: bf16[128,128], index: 2, kind: input, shape index: {}]   ;;  %s2426_s3 = inlined_call_operand.hbm [shape: bf16[128,128], index: 3, kind: input, shape index: {}]   ;;  %s2427_s4 = inlined_call_operand.hbm [shape: bf16[128,128], index: 4, kind: input, shape index: {}]   ;;  %s2428_s5 = inlined_call_operand.hbm [shape: f32[1,128], index: 5, kind: input, shape index: {}]   ;;  %s2429_s6 = inlined_call_operand.vmem [shape: f32[8,128], index: 6, kind: input, shape index: {}]   ;;  %s2430_s7 = inlined_call_operand.vmem [shape: f32[128,1], index: 7, kind: output, shape index: {}]  }
   0x1   :  { %13 = vsyncpa [#allocation5], 0  ;;  %s37_s26 = sshll.u32 %s2427_s4, 4  ;;  %s1805_s27 = smov [#allocation4]   ;;  %s38_s26 = int_to_ptr.hbm [resolvable:$true] %s37_s26 }
   0x2   :  { %s39_s28 = sshll.u32 %s1805_s27, 4  ;;  %s24_s8 = sshll.u32 %s2426_s3, 4  ;;  %s40_s28 = int_to_ptr.vmem [resolvable:$true] %s39_s28  ;;  %s25_s8 = int_to_ptr.hbm [resolvable:$true] %s24_s8 }
   0x3   :  { %s1806_s9 = smov 64   ;;  %s1807_s10 = smov 4  }
   0x4   :  { %45 = dma.hbm_to_vmem [thread:$0]  %s38_s26, 1024, %s40_s28, [#allocation5], %s1806_s9, %s1806_s9, %s1807_s10  }
   0x5   :  { %s1808_s11 = smov [#allocation2]   ;;  %s51_s15 = sshll.u32 %s2428_s5, 4  ;;  %s52_s15 = int_to_ptr.hbm [resolvable:$true] %s51_s15 }
   0x6   :  { %s26_s12 = sshll.u32 %s1808_s11, 4  ;;  %s1809_s4 = smov [#allocation6]   ;;  %s27_s12 = int_to_ptr.vmem [resolvable:$true] %s26_s12 }
   0x7   :  { %32 = dma.hbm_to_vmem [thread:$0]  %s25_s8, 1024, %s27_s12, [#allocation3], %s1806_s9, %s1806_s9, %s1807_s10  }
   0x8   :  { %s53_s16 = sshll.u32 %s1809_s4, 4  ;;  %s54_s16 = int_to_ptr.vmem [resolvable:$true] %s53_s16 }
   0x9   :  { %56 = dma.hbm_to_vmem [thread:$0]  %s52_s15, 16, %s54_s16, [#allocation5]  }
   0xa   :  { %1801 = dma.done.wait [#allocation3], 1024  }
   0xb   :  { %1802 = vsyncadd [#allocation3], 4294966272 }
   0xc   :  { %1803 = dma.done.wait [#allocation5], 1040  }
   0xd   :  { %1804 = vsyncadd [#allocation5], 4294966256  ;;  %v1651_v0 = vld [vmem:[%s2424_s1 + $0x38] sm:$0xff]  ;;  %v1650_v3 = vld [vmem:[%s2424_s1 + $0x30] sm:$0xff]  ;;  %vm534_vm0 = vcmask 1041408   ;;  %vm509_vm1 = vcmask 949248  }
   0xe   :  { %v1865_v1 = vld [vmem:[%s2424_s1 + $0xb8] sm:$0xff]  ;;  %538 = vmatpush.bf16.msra.mxu0 %v1651_v0  ;;  %1699 = vmatpush.bf16.msra.mxu3 %v1651_v0  ;;  %v1880_v4 = vld [vmem:[%s2424_s1 + $0xb0] sm:$0xff]  ;;  %v1649_v6 = vld [vmem:[%s2424_s1 + $0x28] sm:$0xff]  ;;  %vm1233_vm2 = vcmask 7168  }
   0xf   :  { %v1870_v2 = vld [vmem:[%s2424_s1 + $0x78] sm:$0xff]  ;;  %1715 = vmatpush.bf16.msra.mxu2 %v1865_v1  ;;  %v1885_v5 = vld [vmem:[%s2424_s1 + $0x70] sm:$0xff]  ;;  %v1895_v7 = vld [vmem:[%s2424_s1 + $0xa8] sm:$0xff] }
  0x10   :  { %1707 = vmatpush.bf16.msra.mxu1 %v1870_v2  ;;  %v1900_v8 = vld [vmem:[%s2424_s1 + $0x68] sm:$0xff]  ;;  %v1648_v9 = vld [vmem:[%s2424_s1 + $0x20] sm:$0xff]  ;;  %v1647_v12 = vld [vmem:[%s2424_s1 + $0x18] sm:$0xff] }
  0x11   :  { %v1910_v10 = vld [vmem:[%s2424_s1 + $0xa0] sm:$0xff]  ;;  %v1925_v13 = vld [vmem:[%s2424_s1 + $0x98] sm:$0xff]  ;;  %v1646_v16 = vld [vmem:[%s2424_s1 + $0x10] sm:$0xff] }
  0x12   :  { %539 = vmatpush.bf16.msra.mxu0 %v1650_v3  ;;  %1700 = vmatpush.bf16.msra.mxu3 %v1650_v3  ;;  %v1915_v11 = vld [vmem:[%s2424_s1 + $0x60] sm:$0xff]  ;;  %v1930_v14 = vld [vmem:[%s2424_s1 + $0x58] sm:$0xff]  ;;  %v1943_v17 = vld [vmem:[%s2424_s1 + $0x90] sm:$0xff] }
  0x13   :  { %1716 = vmatpush.bf16.msra.mxu2 %v1880_v4  ;;  %v166_v15 = vld [vmem:[%s2424_s1 + $0xf8] sm:$0x3]  ;;  %v1948_v18 = vld [vmem:[%s2424_s1 + $0x50] sm:$0xff]  ;;  %v1645_v20 = vld [vmem:[%s2424_s1 + $0x8] sm:$0xff] }
  0x14   :  { %1708 = vmatpush.bf16.msra.mxu1 %v1885_v5  ;;  %v445_v19 = vunpack.c.l.b16 %v166_v15  ;;  %v1958_v21 = vld [vmem:[%s2424_s1 + $0x88] sm:$0xff]  ;;  %v1644_v24 = vld [vmem:[%s2424_s1] sm:$0xff]  ;;  %v1614_v26 = vld [vmem:[%s2423_s0 + $0xc] sm:$0xf0] }
  0x15   :  { %v1653_v22 = vld [vmem:[%s2424_s1 + $0x48] sm:$0xff]  ;;  %v1258_v25 = vld [vmem:[%s2423_s0] sm:$0xf]  ;;  %v1622_v28 = vld [vmem:[%s2423_s0 + $0x4c] sm:$0xf0] }
  0x16   :  { %540 = vmatpush.bf16.msra.mxu0 %v1649_v6  ;;  %1701 = vmatpush.bf16.msra.mxu3 %v1649_v6  ;;  %v477_v23 = vpack.c.b16 %v445_v19, %v445_v19  ;;  %v1290_v27 = vld [vmem:[%s2423_s0 + $0x40] sm:$0xf]  ;;  %v1298_v31 = vld [vmem:[%s2423_s0 + $0x48] sm:$0xf]  ;;  %v1623_v32 = vld [vmem:[%s2423_s0 + $0x54] sm:$0xf0]  ;;  %v1259_v34 = vor.u32 %v1614_v26, %v1258_v25 }
  0x17   :  { %1717 = vmatpush.bf16.msra.mxu2 %v1895_v7  ;;  %v1982_v29 = vld [vmem:[%s2424_s1 + $0x80] sm:$0xff]  ;;  %v1291_v35 = vor.u32 %v1622_v28, %v1290_v27  ;;  %v1292_v37 = vld [vmem:[%s2423_s0 + $0x50] sm:$0xf0]  ;;  %v1299_v38 = vor.u32 %v1623_v32, %v1298_v31  ;;  %v1673_v41 = vld [vmem:[%s2424_s1 + $0xe8] sm:$0xff] }
  0x18   :  { %1709 = vmatpush.bf16.msra.mxu1 %v1900_v8  ;;  %v536_v30 = vsel %vm534_vm0, %v477_v23, 0  ;;  %v1652_v33 = vld [vmem:[%s2424_s1 + $0x40] sm:$0xff]  ;;  %v1674_v40 = vld [vmem:[%s2424_s1 + $0xf0] sm:$0xff]  ;;  %v1314_v47 = vld [vmem:[%s2423_s0 + $0x68] sm:$0xf] }
  0x19   :  { %v1620_v36 = vld [vmem:[%s2423_s0 + $0x44] sm:$0xf]  ;;  %v1274_v43 = vld [vmem:[%s2423_s0 + $0x20] sm:$0xf]  ;;  %v1618_v44 = vld [vmem:[%s2423_s0 + $0x2c] sm:$0xf0] }
  0x1a   :  { %541 = vmatpush.bf16.msra.mxu0 %v1648_v9  ;;  %1702 = vmatpush.bf16.msra.mxu3 %v1648_v9  ;;  %v1295_v39 = vor.u32 %v1620_v36, %v1292_v37  ;;  %v1672_v42 = vld [vmem:[%s2424_s1 + $0xe0] sm:$0xff]  ;;  %v1626_v46 = vld [vmem:[%s2423_s0 + $0x6c] sm:$0xf0]  ;;  %v1627_v48 = vld [vmem:[%s2423_s0 + $0x74] sm:$0xf0]  ;;  %v1275_v49 = vor.u32 %v1618_v44, %v1274_v43 }
  0x1b   :  { %1718 = vmatpush.bf16.msra.mxu2 %v1910_v10  ;;  %v1306_v45 = vld [vmem:[%s2423_s0 + $0x60] sm:$0xf]  ;;  %v1624_v51 = vld [vmem:[%s2423_s0 + $0x64] sm:$0xf]  ;;  %v1308_v52 = vld [vmem:[%s2423_s0 + $0x70] sm:$0xf0]  ;;  %v1315_v53 = vor.u32 %v1627_v48, %v1314_v47 }
  0x1c   :  { %1710 = vmatpush.bf16.msra.mxu1 %v1915_v11  ;;  %v1307_v50 = vor.u32 %v1626_v46, %v1306_v45  ;;  %v1311_v54 = vor.u32 %v1624_v51, %v1308_v52  ;;  %v1671_v55 = vld [vmem:[%s2424_s1 + $0xd8] sm:$0xff]  ;;  %v1670_v56 = vld [vmem:[%s2424_s1 + $0xd0] sm:$0xff]  ;;  %v1322_v57 = vld [vmem:[%s2423_s0 + $0x80] sm:$0xf] }
  0x1d   :  { %v1630_v58 = vld [vmem:[%s2423_s0 + $0x8c] sm:$0xf0]  ;;  %v1612_v59 = vld [vmem:[%s2423_s0 + $0x4] sm:$0xf]  ;;  %v1260_v60 = vld [vmem:[%s2423_s0 + $0x10] sm:$0xf0] }
  0x1e   :  { %542 = vmatpush.bf16.msra.mxu0 %v1647_v12  ;;  %1703 = vmatpush.bf16.msra.mxu3 %v1647_v12  ;;  %v1330_v61 = vld [vmem:[%s2423_s0 + $0x88] sm:$0xf]  ;;  %v1631_v62 = vld [vmem:[%s2423_s0 + $0x94] sm:$0xf0]  ;;  %v1323_v63 = vor.u32 %v1630_v58, %v1322_v57  ;;  %v1263_v0 = vor.u32 %v1612_v59, %v1260_v60  ;;  %v1324_v3 = vld [vmem:[%s2423_s0 + $0x90] sm:$0xf0] }
  0x1f   :  { %1719 = vmatpush.bf16.msra.mxu2 %v1925_v13  ;;  %v1669_v6 = vld [vmem:[%s2424_s1 + $0xc8] sm:$0xff]  ;;  %v1616_v9 = vld [vmem:[%s2423_s0 + $0x24] sm:$0xf]  ;;  %v1615_v23 = vld [vmem:[%s2423_s0 + $0x14] sm:$0xf0] }
  0x20   :  { %1711 = vmatpush.bf16.msra.mxu1 %v1930_v14  ;;  %v1632_v15 = vld [vmem:[%s2423_s0 + $0xa4] sm:$0xf]  ;;  %v1356_v28 = vld [vmem:[%s2423_s0 + $0xd0] sm:$0xf0]  ;;  %v1370_v31 = vld [vmem:[%s2423_s0 + $0xe0] sm:$0xf] }
  0x21   :  { %v1668_v19 = vld [vmem:[%s2424_s1 + $0xc0] sm:$0xff]  ;;  %v1642_v32 = vld [vmem:[%s2423_s0 + $0xec] sm:$0xf0]  ;;  %v1643_v36 = vld [vmem:[%s2423_s0 + $0xf4] sm:$0xf0] }
  0x22   :  { %543 = vmatpush.bf16.msra.mxu0 %v1646_v16  ;;  %1704 = vmatpush.bf16.msra.mxu3 %v1646_v16  ;;  %v1340_v16 = vld [vmem:[%s2423_s0 + $0xb0] sm:$0xf0]  ;;  %v1636_v27 = vld [vmem:[%s2423_s0 + $0xc4] sm:$0xf]  ;;  %v1371_v37 = vor.u32 %v1642_v32, %v1370_v31  ;;  %v1613_v43 = vld [vmem:[%s2423_s0 + $0xc] sm:$0xf] }
  0x23   :  { %1720 = vmatpush.bf16.msra.mxu2 %v1943_v17  ;;  %v1268_v44 = vld [vmem:[%s2423_s0 + $0x18] sm:$0xf0]  ;;  %v1617_v46 = vld [vmem:[%s2423_s0 + $0x2c] sm:$0xf]  ;;  %v2266_v32 = vld [vmem:[%s2429_s6] sm:$0xff] }
  0x24   :  { %1712 = vmatpush.bf16.msra.mxu1 %v1948_v18  ;;  %v1271_v45 = vor.u32 %v1613_v43, %v1268_v44  ;;  %v1284_v47 = vld [vmem:[%s2423_s0 + $0x38] sm:$0xf0]  ;;  %v1629_v60 = vld [vmem:[%s2423_s0 + $0x8c] sm:$0xf] }
  0x25   :  { %v1287_v48 = vor.u32 %v1617_v46, %v1284_v47 }
  0x26   :  { %544 = vmatpush.bf16.msra.mxu0 %v1645_v20  ;;  %1705 = vmatpush.bf16.msra.mxu3 %v1645_v20  ;;  %v1354_v20 = vld [vmem:[%s2423_s0 + $0xc0] sm:$0xf] }
  0x27   :  { %1721 = vmatpush.bf16.msra.mxu2 %v1958_v21 }
  0x28   :  { %1713 = vmatpush.bf16.msra.mxu1 %v1653_v22 }
  0x2a   :  { %545 = vmatpush.bf16.msra.mxu0 %v1644_v24  ;;  %1706 = vmatpush.bf16.msra.mxu3 %v1644_v24  ;;  %v1639_v24 = vld [vmem:[%s2423_s0 + $0xd4] sm:$0xf0] }
  0x2b   :  { %1722 = vmatpush.bf16.msra.mxu2 %v1982_v29 }
  0x2c   :  { %1714 = vmatpush.bf16.msra.mxu1 %v1652_v33 }
  0x2d   :  { %546 = vmatmul.bf16.vlgmr.msra.gmra.mxu0 %v1259_v34  ;;  %556 = vmatmul.bf16.vlgmr.msra.gmra.mxu3 %v1291_v35  ;;  %v1619_v34 = vld [vmem:[%s2423_s0 + $0x34] sm:$0xf0]  ;;  %v1378_v35 = vld [vmem:[%s2423_s0 + $0xe8] sm:$0xf] }
  0x2e   :  { %685 = vmatpush.bf16.msrb.mxu3 %v536_v30  ;;  %587 = vmatpush.bf16.msrb.mxu0 %v1870_v2  ;;  %v1628_v2 = vld [vmem:[%s2423_s0 + $0x84] sm:$0xf]  ;;  %v1359_v30 = vor.u32 %v1636_v27, %v1356_v28 }
  0x2f   :  { %654 = vmatmul.bf16.vlgmr.msra.gmra.mxu2 %v1299_v38  ;;  %605 = vmatmul.bf16.vlgmr.msra.gmra.mxu1 %v1295_v39  ;;  %v1640_v39 = vld [vmem:[%s2423_s0 + $0xe4] sm:$0xf] }
  0x30   :  { %v1675_v27 = vld [vmem:[%s2425_s2] sm:$0xff] }
  0x32   :  { %588 = vmatpush.bf16.msrb.mxu0 %v1885_v5  ;;  %686 = vmatpush.bf16.msrb.mxu3 %v1674_v40  ;;  %v1331_v5 = vor.u32 %v1631_v62, %v1330_v61  ;;  %v1372_v40 = vld [vmem:[%s2423_s0 + $0xf0] sm:$0xf0]  ;;  %v1332_v61 = vld [vmem:[%s2423_s0 + $0x98] sm:$0xf0] }
  0x36   :  { %589 = vmatpush.bf16.msrb.mxu0 %v1900_v8  ;;  %687 = vmatpush.bf16.msrb.mxu3 %v1673_v41  ;;  %v1338_v8 = vld [vmem:[%s2423_s0 + $0xa0] sm:$0xf]  ;;  %v1379_v41 = vor.u32 %v1643_v36, %v1378_v35 }
  0x3a   :  { %590 = vmatpush.bf16.msrb.mxu0 %v1915_v11  ;;  %688 = vmatpush.bf16.msrb.mxu3 %v1672_v42  ;;  %v1635_v11 = vld [vmem:[%s2423_s0 + $0xb4] sm:$0xf0]  ;;  %v1375_v42 = vor.u32 %v1640_v39, %v1372_v40 }
  0x3d   :  { %551 = vmatmul.bf16.gmra.mxu0 %v1275_v49  ;;  %561 = vmatmul.bf16.gmra.mxu3 %v1307_v50  ;;  %v1621_v49 = vld [vmem:[%s2423_s0 + $0x4c] sm:$0xf]  ;;  %v1300_v50 = vld [vmem:[%s2423_s0 + $0x58] sm:$0xf0] }
  0x3e   :  { %591 = vmatpush.bf16.msrb.mxu0 %v1930_v14  ;;  %689 = vmatpush.bf16.msrb.mxu3 %v1671_v55  ;;  %v1303_v51 = vor.u32 %v1621_v49, %v1300_v50  ;;  %v1316_v55 = vld [vmem:[%s2423_s0 + $0x78] sm:$0xf0] }
  0x3f   :  { %659 = vmatmul.bf16.gmra.mxu2 %v1315_v53  ;;  %610 = vmatmul.bf16.gmra.mxu1 %v1311_v54  ;;  %v1625_v54 = vld [vmem:[%s2423_s0 + $0x6c] sm:$0xf] }
  0x40   :  { %v1319_v57 = vor.u32 %v1625_v54, %v1316_v55 }
  0x42   :  { %592 = vmatpush.bf16.msrb.mxu0 %v1948_v18  ;;  %690 = vmatpush.bf16.msrb.mxu3 %v1670_v56 }
  0x46   :  { %593 = vmatpush.bf16.msrb.mxu0 %v1653_v22  ;;  %691 = vmatpush.bf16.msrb.mxu3 %v1669_v6  ;;  %v1266_v22 = vld [vmem:[%s2423_s0 + $0x8] sm:$0xf] }
  0x47   :  { %v1267_v26 = vor.u32 %v1615_v23, %v1266_v22  ;;  %v1677_v22 = vld [vmem:[%s2425_s2 + $0x10] sm:$0xff]  ;;  %v1676_v23 = vld [vmem:[%s2425_s2 + $0x8] sm:$0xff] }
  0x4a   :  { %594 = vmatpush.bf16.msrb.mxu0 %v1652_v33  ;;  %692 = vmatpush.bf16.msrb.mxu3 %v1668_v19  ;;  %v1282_v33 = vld [vmem:[%s2423_s0 + $0x28] sm:$0xf]  ;;  %v1678_v19 = vld [vmem:[%s2425_s2 + $0x18] sm:$0xff] }
  0x4b   :  { %v1283_v38 = vor.u32 %v1619_v34, %v1282_v33  ;;  %v2269_v33 = vperm.slane %v2266_v32, 0 }
  0x4d   :  { %566 = vmatmul.bf16.gmra.mxu3 %v1323_v63  ;;  %595 = vmatmul.bf16.vlgmr.msrb.gmra.mxu0 %v1263_v0  ;;  %v1335_v63 = vor.u32 %v1629_v60, %v1332_v61 }
  0x4e   :  { %636 = vmatpush.bf16.msra.mxu0 %v1865_v1  ;;  %v1327_v1 = vor.u32 %v1628_v2, %v1324_v3 }
  0x4f   :  { %664 = vmatmul.bf16.gmra.mxu2 %v1331_v5  ;;  %v1633_v5 = vld [vmem:[%s2423_s0 + $0xac] sm:$0xf] }
  0x50   :  { %615 = vmatmul.bf16.gmra.mxu1 %v1327_v1  ;;  %v1348_v1 = vld [vmem:[%s2423_s0 + $0xb8] sm:$0xf0] }
  0x52   :  { %637 = vmatpush.bf16.msra.mxu0 %v1880_v4  ;;  %v1634_v4 = vld [vmem:[%s2423_s0 + $0xac] sm:$0xf0] }
  0x53   :  { %v1339_v12 = vor.u32 %v1634_v4, %v1338_v8  ;;  %v1351_v8 = vor.u32 %v1633_v5, %v1348_v1  ;;  %v1682_v4 = vld [vmem:[%s2425_s2 + $0x38] sm:$0xff] }
  0x56   :  { %638 = vmatpush.bf16.msra.mxu0 %v1895_v7  ;;  %v1276_v7 = vld [vmem:[%s2423_s0 + $0x30] sm:$0xf0] }
  0x57   :  { %v1279_v14 = vor.u32 %v1616_v9, %v1276_v7 }
  0x5a   :  { %639 = vmatpush.bf16.msra.mxu0 %v1910_v10  ;;  %v1346_v10 = vld [vmem:[%s2423_s0 + $0xa8] sm:$0xf] }
  0x5b   :  { %v1347_v18 = vor.u32 %v1635_v11, %v1346_v10  ;;  %v1681_v10 = vld [vmem:[%s2425_s2 + $0x30] sm:$0xff]  ;;  %v1680_v11 = vld [vmem:[%s2425_s2 + $0x28] sm:$0xff] }
  0x5d   :  { %571 = vmatmul.bf16.gmra.mxu3 %v1339_v12  ;;  %600 = vmatmul.bf16.gmra.mxu0 %v1279_v14  ;;  %v1637_v12 = vld [vmem:[%s2423_s0 + $0xcc] sm:$0xf]  ;;  %v1364_v14 = vld [vmem:[%s2423_s0 + $0xd8] sm:$0xf0] }
  0x5e   :  { %640 = vmatpush.bf16.msra.mxu0 %v1925_v13  ;;  %v1343_v13 = vor.u32 %v1632_v15, %v1340_v16 }
  0x5f   :  { %669 = vmatmul.bf16.gmra.mxu2 %v1347_v18  ;;  %v1367_v18 = vor.u32 %v1637_v12, %v1364_v14  ;;  %v1690_v14 = vld [vmem:[#allocation2 + $0x38] sm:$0xff] }
  0x60   :  { %620 = vmatmul.bf16.gmra.mxu1 %v1343_v13  ;;  %v1679_v13 = vld [vmem:[%s2425_s2 + $0x20] sm:$0xff] }
  0x61   :  { %961 = vmatpush.bf16.msrb.mxu1 %v1690_v14 }
  0x62   :  { %641 = vmatpush.bf16.msra.mxu0 %v1943_v17  ;;  %v1638_v17 = vld [vmem:[%s2423_s0 + $0xcc] sm:$0xf0] }
  0x63   :  { %v1355_v25 = vor.u32 %v1638_v17, %v1354_v20 }
  0x66   :  { %642 = vmatpush.bf16.msra.mxu0 %v1958_v21  ;;  %v1362_v21 = vld [vmem:[%s2423_s0 + $0xc8] sm:$0xf] }
  0x6a   :  { %643 = vmatpush.bf16.msra.mxu0 %v1982_v29  ;;  %v1363_v29 = vor.u32 %v1639_v24, %v1362_v21  ;;  %v1641_v21 = vld [vmem:[%s2423_s0 + $0xec] sm:$0xf]  ;;  %v1380_v24 = vld [vmem:[%s2423_s0 + $0xf8] sm:$0xf0] }
  0x6d   :  { %576 = vmatmul.bf16.gmra.mxu3 %v1355_v25  ;;  %644 = vmatmul.bf16.vlgmr.msra.gmra.mxu0 %v1267_v26  ;;  %v1383_v26 = vor.u32 %v1641_v21, %v1380_v24 }
  0x6e   :  { %823 = vmatpush.bf16.msrb.mxu0 %v1682_v4 }
  0x6f   :  { %674 = vmatmul.bf16.gmra.mxu2 %v1363_v29 }
  0x70   :  { %625 = vmatmul.bf16.gmra.mxu1 %v1359_v30 }
  0x72   :  { %824 = vmatpush.bf16.msrb.mxu0 %v1681_v10 }
  0x76   :  { %825 = vmatpush.bf16.msrb.mxu0 %v1680_v11 }
  0x7a   :  { %826 = vmatpush.bf16.msrb.mxu0 %v1679_v13 }
  0x7d   :  { %581 = vmatmul.bf16.gmra.mxu3 %v1371_v37  ;;  %649 = vmatmul.bf16.gmra.mxu0 %v1283_v38 }
  0x7e   :  { %827 = vmatpush.bf16.msrb.mxu0 %v1678_v19 }
  0x7f   :  { %679 = vmatmul.bf16.gmra.mxu2 %v1379_v41 }
  0x80   :  { %630 = vmatmul.bf16.gmra.mxu1 %v1375_v42 }
  0x82   :  { %828 = vmatpush.bf16.msrb.mxu0 %v1677_v22  ;;  %v1689_v22 = vld [vmem:[#allocation2 + $0x30] sm:$0xff] }
  0x83   :  { %962 = vmatpush.bf16.msrb.mxu1 %v1689_v22 }
  0x86   :  { %829 = vmatpush.bf16.msrb.mxu0 %v1676_v23 }
  0x8a   :  { %830 = vmatpush.bf16.msrb.mxu0 %v1675_v27 }
  0x8d   :  { %1508 = vmatmul.msk.bf16.vlgmr.msrb.gmra.mxu3 %vm509_vm1, %v1271_v45 }
  0x9d   :  { %1509 = vmatmul.msk.bf16.gmra.mxu3 %vm509_vm1, %v1287_v48 }
  0xaa   :  { %v547_v53 = vpop.f32.mrf.mxu0 }
  0xab   :  { %v548_v34 = vadd.f32 %v547_v53, %v2269_v33 }
  0xac   :  { %v606_v37 = vpop.f32.mrf.mxu1 }
  0xad   :  { %1510 = vmatmul.msk.bf16.gmra.mxu3 %vm509_vm1, %v1303_v51 }
  0xb0   :  { %v2176_v52 = vpop.f32.mrf.mxu3 }
  0xb2   :  { %v549_v58 = vpop.f32.mrf.mxu0  ;;  %v655_v42 = vpop.f32.mrf.mxu2 }
  0xb3   :  { %v550_v38 = vadd.f32 %v549_v58, %v2269_v33 }
  0xb4   :  { %v608_v50 = vpop.f32.mrf.mxu1 }
  0xb8   :  { %v2184_v56 = vpop.f32.mrf.mxu3 }
  0xba   :  { %v2197_v0 = vpop.f32.mrf.mxu0  ;;  %v657_v54 = vpop.f32.mrf.mxu2 }
  0xbb   :  { %v553_v53 = vadd.f32 %v2197_v0, %v2269_v33  ;;  %v558_v0 = vadd.f32 %v2176_v52, %v2269_v33 }
  0xbc   :  { %v611_v5 = vpop.f32.mrf.mxu1 }
  0xbd   :  { %1511 = vmatmul.msk.bf16.gmra.mxu3 %vm509_vm1, %v1319_v57  ;;  %v607_v19 = vadd.f32 %v606_v37, %v558_v0 }
  0xbf   :  { %v656_v21 = vadd.f32 %v655_v42, %v607_v19 }
  0xc0   :  { %v2187_v59 = vpop.f32.mrf.mxu3 }
  0xc2   :  { %v2202_v3 = vpop.f32.mrf.mxu0  ;;  %v660_v10 = vpop.f32.mrf.mxu2 }
  0xc3   :  { %v555_v57 = vadd.f32 %v2202_v3, %v2269_v33  ;;  %v560_v3 = vadd.f32 %v2184_v56, %v2269_v33 }
  0xc8   :  { %v2195_v62 = vpop.f32.mrf.mxu3 }
  0xc9   :  { %v565_v37 = vadd.f32 %v2195_v62, %v2269_v33 }
  0xca   :  { %v596_v9 = vpop.f32.mrf.mxu0  ;;  %v662_v23 = vpop.f32.mrf.mxu2 }
  0xcb   :  { %v597_v39 = vadd.f32 %v596_v9, %v548_v34 }
  0xcd   :  { %1512 = vmatmul.msk.bf16.gmra.mxu3 %vm509_vm1, %v1335_v63 }
  0xd0   :  { %v2200_v2 = vpop.f32.mrf.mxu3 }
  0xd2   :  { %v598_v15 = vpop.f32.mrf.mxu0 }
  0xd3   :  { %v599_v40 = vadd.f32 %v598_v15, %v550_v38 }
  0xd8   :  { %v2210_v6 = vpop.f32.mrf.mxu3 }
  0xda   :  { %v601_v17 = vpop.f32.mrf.mxu0 }
  0xdb   :  { %v602_v58 = vadd.f32 %v601_v17, %v553_v53  ;;  %v609_v17 = vadd.f32 %v608_v50, %v560_v3  ;;  %v568_v50 = vadd.f32 %v2200_v2, %v2269_v33  ;;  %v570_v53 = vadd.f32 %v2210_v6, %v2269_v33 }
  0xdd   :  { %1513 = vmatmul.msk.bf16.gmra.mxu3 %vm509_vm1, %v1351_v8  ;;  %v658_v24 = vadd.f32 %v657_v54, %v609_v17  ;;  %v1687_v54 = vld [vmem:[#allocation2 + $0x20] sm:$0xff] }
  0xe0   :  { %v2216_v7 = vpop.f32.mrf.mxu3 }
  0xe2   :  { %v603_v28 = vpop.f32.mrf.mxu0 }
  0xe3   :  { %v604_v61 = vadd.f32 %v603_v28, %v555_v57 }
  0xe8   :  { %v2230_v16 = vpop.f32.mrf.mxu3 }
  0xe9   :  { %v575_v14 = vadd.f32 %v2230_v16, %v2269_v33 }
  0xea   :  { %v645_v30 = vpop.f32.mrf.mxu0 }
  0xeb   :  { %v646_v41 = vadd.f32 %v645_v30, %v597_v39 }
  0xed   :  { %1514 = vmatmul.msk.bf16.gmra.mxu3 %vm509_vm1, %v1367_v18  ;;  %v613_v18 = vpop.f32.mrf.mxu1 }
  0xf0   :  { %v2239_v20 = vpop.f32.mrf.mxu3 }
  0xf1   :  { %v578_v16 = vadd.f32 %v2239_v20, %v2269_v33 }
  0xf2   :  { %v647_v35 = vpop.f32.mrf.mxu0 }
  0xf3   :  { %v648_v43 = vadd.f32 %v647_v35, %v599_v40  ;;  %v563_v35 = vadd.f32 %v2187_v59, %v2269_v33  ;;  %v614_v40 = vadd.f32 %v613_v18, %v565_v37 }
  0xf5   :  { %v616_v30 = vpop.f32.mrf.mxu1  ;;  %v612_v39 = vadd.f32 %v611_v5, %v563_v35 }
  0xf6   :  { %v617_v57 = vadd.f32 %v616_v30, %v568_v50 }
  0xf8   :  { %v2253_v25 = vpop.f32.mrf.mxu3 }
  0xf9   :  { %v580_v30 = vadd.f32 %v2253_v25, %v2269_v33 }
  0xfa   :  { %v650_v47 = vpop.f32.mrf.mxu0 }
  0xfb   :  { %v651_v63 = vadd.f32 %v650_v47, %v602_v58 }
  0xfd   :  { %1515 = vmatmul.msk.bf16.gmra.mxu3 %vm509_vm1, %v1383_v26  ;;  %v618_v42 = vpop.f32.mrf.mxu1 }
 0x100   :  { %v2259_v29 = vpop.f32.mrf.mxu3 }
 0x102   :  { %v652_v60 = vpop.f32.mrf.mxu0 }
 0x103   :  { %v653_v1 = vadd.f32 %v652_v60, %v604_v61  ;;  %v619_v60 = vadd.f32 %v618_v42, %v570_v53 }
 0x105   :  { %v621_v62 = vpop.f32.mrf.mxu1 }
 0x108   :  { %v2261_v31 = vpop.f32.mrf.mxu3 }
 0x110   :  { %v694_v36 = vpop.f32.mrf.mxu3 }
 0x111   :  { %v695_v44 = vadd.f32 %v694_v36, %v646_v41  ;;  %v665_v36 = vpop.f32.mrf.mxu2  ;;  %v1688_v41 = vld [vmem:[#allocation2 + $0x28] sm:$0xff] }
 0x112   :  { %963 = vmatpush.bf16.msrb.mxu1 %v1688_v41  ;;  %v666_v61 = vadd.f32 %v665_v36, %v617_v57 }
 0x113   :  { %v734_v48 = vmax.f32 %v695_v44, 0.0  ;;  %v663_v44 = vadd.f32 %v662_v23, %v614_v40 }
 0x116   :  { %964 = vmatpush.bf16.msrb.mxu1 %v1687_v54 }
 0x118   :  { %v696_v45 = vpop.f32.mrf.mxu3 }
 0x119   :  { %v697_v46 = vadd.f32 %v696_v45, %v648_v43  ;;  %v661_v43 = vadd.f32 %v660_v10, %v612_v39 }
 0x11b   :  { %v735_v49 = vmax.f32 %v697_v46, 0.0  ;;  %v667_v46 = vpop.f32.mrf.mxu2 }
 0x11d   :  { %v750_v51 = vpack.c.bf16 %v735_v49, %v734_v48 }
 0x11f   :  { %831 = vmatmul.bf16.vlgmr.msrb.gmra.mxu0 %v750_v51 }
 0x120   :  { %v699_v55 = vpop.f32.mrf.mxu3 }
 0x121   :  { %v700_v8 = vadd.f32 %v699_v55, %v651_v63  ;;  %v668_v63 = vadd.f32 %v667_v46, %v619_v60  ;;  %v585_v46 = vadd.f32 %v2261_v31, %v2269_v33  ;;  %v2302_v31 = vperm.slane %v2266_v32, 1 }
 0x123   :  { %v736_v11 = vmax.f32 %v700_v8, 0.0  ;;  %v670_v58 = vpop.f32.mrf.mxu2 }
 0x128   :  { %v701_v4 = vpop.f32.mrf.mxu3 }
 0x129   :  { %v702_v9 = vadd.f32 %v701_v4, %v653_v1  ;;  %v623_v1 = vpop.f32.mrf.mxu1 }
 0x12a   :  { %v624_v18 = vadd.f32 %v623_v1, %v575_v14  ;;  %v1698_v14 = vld [vmem:[#allocation4 + $0x38] sm:$0xff] }
 0x12b   :  { %v737_v12 = vmax.f32 %v702_v9, 0.0  ;;  %v672_v10 = vpop.f32.mrf.mxu2  ;;  %1099 = vmatpush.bf16.msrb.mxu2 %v1698_v14 }
 0x12c   :  { %v673_v22 = vadd.f32 %v672_v10, %v624_v18 }
 0x12d   :  { %v751_v15 = vpack.c.bf16 %v737_v12, %v736_v11  ;;  %v573_v11 = vadd.f32 %v2216_v7, %v2269_v33  ;;  %v1686_v12 = vld [vmem:[#allocation2 + $0x18] sm:$0xff] }
 0x12e   :  { %965 = vmatpush.bf16.msrb.mxu1 %v1686_v12 }
 0x12f   :  { %836 = vmatmul.bf16.gmra.mxu0 %v751_v15  ;;  %v622_v15 = vadd.f32 %v621_v62, %v573_v11 }
 0x130   :  { %v704_v13 = vpop.f32.mrf.mxu3 }
 0x131   :  { %v705_v26 = vadd.f32 %v704_v13, %v656_v21  ;;  %v626_v3 = vpop.f32.mrf.mxu1  ;;  %v1685_v13 = vld [vmem:[#allocation2 + $0x10] sm:$0xff]  ;;  %v671_v19 = vadd.f32 %v670_v58, %v622_v15 }
 0x132   :  { %966 = vmatpush.bf16.msrb.mxu1 %v1685_v13 }
 0x133   :  { %v738_v52 = vmax.f32 %v705_v26, 0.0  ;;  %v675_v17 = vpop.f32.mrf.mxu2 }
 0x138   :  { %v706_v27 = vpop.f32.mrf.mxu3 }
 0x139   :  { %v707_v28 = vadd.f32 %v706_v27, %v658_v24  ;;  %v628_v27 = vpop.f32.mrf.mxu1 }
 0x13a   :  { %v629_v36 = vadd.f32 %v628_v27, %v580_v30 }
 0x13b   :  { %v739_v34 = vmax.f32 %v707_v28, 0.0 }
 0x13d   :  { %v752_v56 = vpack.c.bf16 %v739_v34, %v738_v52  ;;  %v1684_v52 = vld [vmem:[#allocation2 + $0x8] sm:$0xff]  ;;  %v677_v34 = vpop.f32.mrf.mxu2 }
 0x13e   :  { %967 = vmatpush.bf16.msrb.mxu1 %v1684_v52  ;;  %v678_v39 = vadd.f32 %v677_v34, %v629_v36  ;;  %v1695_v52 = vld [vmem:[#allocation4 + $0x20] sm:$0xff] }
 0x13f   :  { %841 = vmatmul.bf16.gmra.mxu0 %v752_v56  ;;  %v627_v56 = vadd.f32 %v626_v3, %v578_v16  ;;  %v1697_v3 = vld [vmem:[#allocation4 + $0x30] sm:$0xff] }
 0x140   :  { %v709_v38 = vpop.f32.mrf.mxu3  ;;  %1100 = vmatpush.bf16.msrb.mxu2 %v1697_v3 }
 0x141   :  { %v710_v45 = vadd.f32 %v709_v38, %v661_v43  ;;  %v676_v37 = vadd.f32 %v675_v17, %v627_v56  ;;  %v631_v38 = vpop.f32.mrf.mxu1 }
 0x143   :  { %v740_v49 = vmax.f32 %v710_v45, 0.0  ;;  %v583_v45 = vadd.f32 %v2259_v29, %v2269_v33 }
 0x145   :  { %v680_v43 = vpop.f32.mrf.mxu2 }
 0x148   :  { %v711_v47 = vpop.f32.mrf.mxu3 }
 0x149   :  { %v712_v48 = vadd.f32 %v711_v47, %v663_v44  ;;  %v1683_v47 = vld [vmem:[#allocation2] sm:$0xff] }
 0x14a   :  { %968 = vmatpush.bf16.msrb.mxu1 %v1683_v47  ;;  %v1692_v47 = vld [vmem:[#allocation4 + $0x8] sm:$0xff] }
 0x14b   :  { %v741_v59 = vmax.f32 %v712_v48, 0.0  ;;  %v633_v48 = vpop.f32.mrf.mxu1 }
 0x14c   :  { %v634_v50 = vadd.f32 %v633_v48, %v585_v46 }
 0x14d   :  { %v753_v51 = vpack.c.bf16 %v741_v59, %v740_v49  ;;  %v632_v59 = vadd.f32 %v631_v38, %v583_v45 }
 0x14f   :  { %846 = vmatmul.bf16.gmra.mxu0 %v753_v51  ;;  %v682_v51 = vpop.f32.mrf.mxu2  ;;  %v681_v62 = vadd.f32 %v680_v43, %v632_v59 }
 0x150   :  { %v714_v55 = vpop.f32.mrf.mxu3  ;;  %v683_v53 = vadd.f32 %v682_v51, %v634_v50 }
 0x151   :  { %v715_v5 = vadd.f32 %v714_v55, %v666_v61 }
 0x153   :  { %v742_v9 = vmax.f32 %v715_v5, 0.0 }
 0x158   :  { %v716_v8 = vpop.f32.mrf.mxu3 }
 0x159   :  { %v717_v4 = vadd.f32 %v716_v8, %v668_v63 }
 0x15b   :  { %v743_v2 = vmax.f32 %v717_v4, 0.0 }
 0x15d   :  { %v754_v6 = vpack.c.bf16 %v743_v2, %v742_v9 }
 0x15f   :  { %851 = vmatmul.bf16.gmra.mxu0 %v754_v6 }
 0x160   :  { %v719_v0 = vpop.f32.mrf.mxu3 }
 0x161   :  { %v720_v23 = vadd.f32 %v719_v0, %v671_v19 }
 0x163   :  { %v744_v7 = vmax.f32 %v720_v23, 0.0 }
 0x168   :  { %v721_v21 = vpop.f32.mrf.mxu3 }
 0x169   :  { %v722_v24 = vadd.f32 %v721_v21, %v673_v22 }
 0x16b   :  { %v745_v26 = vmax.f32 %v722_v24, 0.0  ;;  %v1696_v24 = vld [vmem:[#allocation4 + $0x28] sm:$0xff] }
 0x16c   :  { %1101 = vmatpush.bf16.msrb.mxu2 %v1696_v24 }
 0x16d   :  { %v755_v28 = vpack.c.bf16 %v745_v26, %v744_v7 }
 0x16f   :  { %856 = vmatmul.bf16.gmra.mxu0 %v755_v28 }
 0x170   :  { %v724_v35 = vpop.f32.mrf.mxu3  ;;  %1102 = vmatpush.bf16.msrb.mxu2 %v1695_v52 }
 0x171   :  { %v725_v40 = vadd.f32 %v724_v35, %v676_v37 }
 0x173   :  { %v746_v44 = vmax.f32 %v725_v40, 0.0  ;;  %v1694_v40 = vld [vmem:[#allocation4 + $0x18] sm:$0xff] }
 0x174   :  { %1103 = vmatpush.bf16.msrb.mxu2 %v1694_v40 }
 0x178   :  { %v726_v41 = vpop.f32.mrf.mxu3 }
 0x179   :  { %v727_v42 = vadd.f32 %v726_v41, %v678_v39 }
 0x17b   :  { %v747_v20 = vmax.f32 %v727_v42, 0.0  ;;  %v1693_v42 = vld [vmem:[#allocation4 + $0x10] sm:$0xff] }
 0x17c   :  { %1104 = vmatpush.bf16.msrb.mxu2 %v1693_v42 }
 0x17d   :  { %v756_v25 = vpack.c.bf16 %v747_v20, %v746_v44 }
 0x17f   :  { %861 = vmatmul.bf16.gmra.mxu0 %v756_v25 }
 0x180   :  { %v729_v49 = vpop.f32.mrf.mxu3  ;;  %1105 = vmatpush.bf16.msrb.mxu2 %v1692_v47 }
 0x181   :  { %v730_v54 = vadd.f32 %v729_v49, %v681_v62 }
 0x183   :  { %v748_v58 = vmax.f32 %v730_v54, 0.0  ;;  %v1691_v54 = vld [vmem:[#allocation4] sm:$0xff] }
 0x184   :  { %1106 = vmatpush.bf16.msrb.mxu2 %v1691_v54 }
 0x188   :  { %v731_v55 = vpop.f32.mrf.mxu3 }
 0x189   :  { %v732_v57 = vadd.f32 %v731_v55, %v683_v53 }
 0x18b   :  { %v749_v60 = vmax.f32 %v732_v57, 0.0 }
 0x18d   :  { %v757_v29 = vpack.c.bf16 %v749_v60, %v748_v58 }
 0x18f   :  { %866 = vmatmul.bf16.gmra.mxu0 %v757_v29 }
 0x19c   :  { %v832_v61 = vpop.f32.mrf.mxu0 }
 0x19d   :  { %v833_v33 = vadd.f32 %v832_v61, %v2302_v31 }
 0x19f   :  { %v872_v1 = vmax.f32 %v833_v33, 0.0 }
 0x1a4   :  { %v834_v63 = vpop.f32.mrf.mxu0 }
 0x1a5   :  { %v835_v5 = vadd.f32 %v834_v63, %v2302_v31 }
 0x1a7   :  { %v873_v8 = vmax.f32 %v835_v5, 0.0  ;;  %v912_v5 = vperm.slane %v2266_v32, 2 }
 0x1a9   :  { %v888_v4 = vpack.c.bf16 %v873_v8, %v872_v1 }
 0x1ab   :  { %969 = vmatmul.bf16.vlgmr.msrb.gmra.mxu1 %v888_v4 }
 0x1ac   :  { %v837_v9 = vpop.f32.mrf.mxu0 }
 0x1ad   :  { %v838_v2 = vadd.f32 %v837_v9, %v2302_v31 }
 0x1af   :  { %v874_v6 = vmax.f32 %v838_v2, 0.0 }
 0x1b4   :  { %v839_v10 = vpop.f32.mrf.mxu0 }
 0x1b5   :  { %v840_v11 = vadd.f32 %v839_v10, %v2302_v31 }
 0x1b7   :  { %v875_v12 = vmax.f32 %v840_v11, 0.0 }
 0x1b9   :  { %v889_v0 = vpack.c.bf16 %v875_v12, %v874_v6 }
 0x1bb   :  { %974 = vmatmul.bf16.gmra.mxu1 %v889_v0 }
 0x1bc   :  { %v842_v15 = vpop.f32.mrf.mxu0 }
 0x1bd   :  { %v843_v18 = vadd.f32 %v842_v15, %v2302_v31 }
 0x1bf   :  { %v876_v17 = vmax.f32 %v843_v18, 0.0 }
 0x1c4   :  { %v844_v13 = vpop.f32.mrf.mxu0 }
 0x1c5   :  { %v845_v19 = vadd.f32 %v844_v13, %v2302_v31 }
 0x1c7   :  { %v877_v22 = vmax.f32 %v845_v19, 0.0 }
 0x1c9   :  { %v890_v23 = vpack.c.bf16 %v877_v22, %v876_v17 }
 0x1cb   :  { %979 = vmatmul.bf16.gmra.mxu1 %v890_v23 }
 0x1cc   :  { %v847_v21 = vpop.f32.mrf.mxu0 }
 0x1cd   :  { %v848_v7 = vadd.f32 %v847_v21, %v2302_v31 }
 0x1cf   :  { %v878_v16 = vmax.f32 %v848_v7, 0.0 }
 0x1d4   :  { %v849_v26 = vpop.f32.mrf.mxu0 }
 0x1d5   :  { %v850_v27 = vadd.f32 %v849_v26, %v2302_v31 }
 0x1d7   :  { %v879_v28 = vmax.f32 %v850_v27, 0.0 }
 0x1d9   :  { %v891_v30 = vpack.c.bf16 %v879_v28, %v878_v16 }
 0x1db   :  { %984 = vmatmul.bf16.gmra.mxu1 %v891_v30 }
 0x1dc   :  { %v852_v34 = vpop.f32.mrf.mxu0 }
 0x1dd   :  { %v853_v35 = vadd.f32 %v852_v34, %v2302_v31 }
 0x1df   :  { %v880_v37 = vmax.f32 %v853_v35, 0.0 }
 0x1e4   :  { %v854_v56 = vpop.f32.mrf.mxu0 }
 0x1e5   :  { %v855_v36 = vadd.f32 %v854_v56, %v2302_v31 }
 0x1e7   :  { %v881_v38 = vmax.f32 %v855_v36, 0.0 }
 0x1e9   :  { %v892_v39 = vpack.c.bf16 %v881_v38, %v880_v37 }
 0x1eb   :  { %989 = vmatmul.bf16.gmra.mxu1 %v892_v39 }
 0x1ec   :  { %v857_v41 = vpop.f32.mrf.mxu0 }
 0x1ed   :  { %v858_v43 = vadd.f32 %v857_v41, %v2302_v31 }
 0x1ef   :  { %v882_v45 = vmax.f32 %v858_v43, 0.0 }
 0x1f4   :  { %v859_v44 = vpop.f32.mrf.mxu0 }
 0x1f5   :  { %v860_v20 = vadd.f32 %v859_v44, %v2302_v31 }
 0x1f7   :  { %v883_v25 = vmax.f32 %v860_v20, 0.0 }
 0x1f9   :  { %v893_v46 = vpack.c.bf16 %v883_v25, %v882_v45 }
 0x1fb   :  { %994 = vmatmul.bf16.gmra.mxu1 %v893_v46 }
 0x1fc   :  { %v862_v48 = vpop.f32.mrf.mxu0 }
 0x1fd   :  { %v863_v49 = vadd.f32 %v862_v48, %v2302_v31 }
 0x1ff   :  { %v884_v51 = vmax.f32 %v863_v49, 0.0 }
 0x204   :  { %v864_v59 = vpop.f32.mrf.mxu0 }
 0x205   :  { %v865_v50 = vadd.f32 %v864_v59, %v2302_v31 }
 0x207   :  { %v885_v62 = vmax.f32 %v865_v50, 0.0 }
 0x209   :  { %v894_v53 = vpack.c.bf16 %v885_v62, %v884_v51 }
 0x20b   :  { %999 = vmatmul.bf16.gmra.mxu1 %v894_v53 }
 0x20c   :  { %v867_v55 = vpop.f32.mrf.mxu0 }
 0x20d   :  { %v868_v57 = vadd.f32 %v867_v55, %v2302_v31 }
 0x20f   :  { %v886_v29 = vmax.f32 %v868_v57, 0.0  ;;  %v2322_v57 = vperm.slane %v2266_v32, 3 }
 0x214   :  { %v869_v58 = vpop.f32.mrf.mxu0 }
 0x215   :  { %v870_v60 = vadd.f32 %v869_v58, %v2302_v31 }
 0x217   :  { %v887_v61 = vmax.f32 %v870_v60, 0.0 }
 0x219   :  { %v895_v33 = vpack.c.bf16 %v887_v61, %v886_v29  ;;  %v2325_v29 = vld [vmem:[#allocation6] ss:$0 sm:$0xff] }
 0x21b   :  { %1004 = vmatmul.bf16.gmra.mxu1 %v895_v33 }
 0x228   :  { %v970_v63 = vpop.f32.mrf.mxu1 }
 0x229   :  { %v971_v1 = vadd.f32 %v970_v63, %v912_v5 }
 0x22b   :  { %v1010_v9 = vmax.f32 %v971_v1, 0.0 }
 0x230   :  { %v972_v8 = vpop.f32.mrf.mxu1 }
 0x231   :  { %v973_v4 = vadd.f32 %v972_v8, %v912_v5 }
 0x233   :  { %v1011_v2 = vmax.f32 %v973_v4, 0.0 }
 0x235   :  { %v1026_v10 = vpack.c.bf16 %v1011_v2, %v1010_v9 }
 0x237   :  { %1107 = vmatmul.bf16.vlgmr.msrb.gmra.mxu2 %v1026_v10 }
 0x238   :  { %v975_v11 = vpop.f32.mrf.mxu1 }
 0x239   :  { %v976_v6 = vadd.f32 %v975_v11, %v912_v5 }
 0x23b   :  { %v1012_v0 = vmax.f32 %v976_v6, 0.0 }
 0x240   :  { %v977_v12 = vpop.f32.mrf.mxu1 }
 0x241   :  { %v978_v14 = vadd.f32 %v977_v12, %v912_v5 }
 0x243   :  { %v1013_v31 = vmax.f32 %v978_v14, 0.0 }
 0x245   :  { %v1027_v15 = vpack.c.bf16 %v1013_v31, %v1012_v0 }
 0x247   :  { %1112 = vmatmul.bf16.gmra.mxu2 %v1027_v15 }
 0x248   :  { %v980_v3 = vpop.f32.mrf.mxu1 }
 0x249   :  { %v981_v18 = vadd.f32 %v980_v3, %v912_v5 }
 0x24b   :  { %v1014_v17 = vmax.f32 %v981_v18, 0.0 }
 0x250   :  { %v982_v13 = vpop.f32.mrf.mxu1 }
 0x251   :  { %v983_v19 = vadd.f32 %v982_v13, %v912_v5 }
 0x253   :  { %v1015_v22 = vmax.f32 %v983_v19, 0.0 }
 0x255   :  { %v1028_v23 = vpack.c.bf16 %v1015_v22, %v1014_v17 }
 0x257   :  { %1117 = vmatmul.bf16.gmra.mxu2 %v1028_v23 }
 0x258   :  { %v985_v21 = vpop.f32.mrf.mxu1 }
 0x259   :  { %v986_v24 = vadd.f32 %v985_v21, %v912_v5 }
 0x25b   :  { %v1016_v27 = vmax.f32 %v986_v24, 0.0 }
 0x260   :  { %v987_v7 = vpop.f32.mrf.mxu1 }
 0x261   :  { %v988_v26 = vadd.f32 %v987_v7, %v912_v5 }
 0x263   :  { %v1017_v16 = vmax.f32 %v988_v26, 0.0 }
 0x265   :  { %v1029_v28 = vpack.c.bf16 %v1017_v16, %v1016_v27 }
 0x267   :  { %1122 = vmatmul.bf16.gmra.mxu2 %v1029_v28 }
 0x268   :  { %v990_v30 = vpop.f32.mrf.mxu1 }
 0x269   :  { %v991_v52 = vadd.f32 %v990_v30, %v912_v5 }
 0x26b   :  { %v1018_v56 = vmax.f32 %v991_v52, 0.0 }
 0x270   :  { %v992_v34 = vpop.f32.mrf.mxu1 }
 0x271   :  { %v993_v35 = vadd.f32 %v992_v34, %v912_v5 }
 0x273   :  { %v1019_v36 = vmax.f32 %v993_v35, 0.0 }
 0x275   :  { %v1030_v37 = vpack.c.bf16 %v1019_v36, %v1018_v56 }
 0x277   :  { %1127 = vmatmul.bf16.gmra.mxu2 %v1030_v37 }
 0x278   :  { %v995_v38 = vpop.f32.mrf.mxu1 }
 0x279   :  { %v996_v39 = vadd.f32 %v995_v38, %v912_v5 }
 0x27b   :  { %v1020_v42 = vmax.f32 %v996_v39, 0.0 }
 0x280   :  { %v997_v40 = vpop.f32.mrf.mxu1 }
 0x281   :  { %v998_v41 = vadd.f32 %v997_v40, %v912_v5 }
 0x283   :  { %v1021_v43 = vmax.f32 %v998_v41, 0.0 }
 0x285   :  { %v1031_v44 = vpack.c.bf16 %v1021_v43, %v1020_v42 }
 0x287   :  { %1132 = vmatmul.bf16.gmra.mxu2 %v1031_v44 }
 0x288   :  { %v1000_v20 = vpop.f32.mrf.mxu1 }
 0x289   :  { %v1001_v45 = vadd.f32 %v1000_v20, %v912_v5 }
 0x28b   :  { %v1022_v47 = vmax.f32 %v1001_v45, 0.0 }
 0x290   :  { %v1002_v25 = vpop.f32.mrf.mxu1 }
 0x291   :  { %v1003_v46 = vadd.f32 %v1002_v25, %v912_v5 }
 0x293   :  { %v1023_v48 = vmax.f32 %v1003_v46, 0.0 }
 0x295   :  { %v1032_v49 = vpack.c.bf16 %v1023_v48, %v1022_v47 }
 0x297   :  { %1137 = vmatmul.bf16.gmra.mxu2 %v1032_v49 }
 0x298   :  { %v1005_v59 = vpop.f32.mrf.mxu1 }
 0x299   :  { %v1006_v50 = vadd.f32 %v1005_v59, %v912_v5 }
 0x29b   :  { %v1024_v53 = vmax.f32 %v1006_v50, 0.0 }
 0x2a0   :  { %v1007_v51 = vpop.f32.mrf.mxu1 }
 0x2a1   :  { %v1008_v62 = vadd.f32 %v1007_v51, %v912_v5 }
 0x2a3   :  { %v1025_v54 = vmax.f32 %v1008_v62, 0.0 }
 0x2a5   :  { %v1033_v55 = vpack.c.bf16 %v1025_v54, %v1024_v53 }
 0x2a7   :  { %1142 = vmatmul.bf16.gmra.mxu2 %v1033_v55  ;;  %v1216_v55 = vperm.slane %v2266_v32, 4 }
 0x2ba   :  { %v1108_v58 = vpop.f32.mrf.mxu2 }
 0x2bb   :  { %v1109_v60 = vadd.f32 %v1108_v58, %v2322_v57 }
 0x2bd   :  { %v1148_v61 = vmax.f32 %v1109_v60, 0.0 }
 0x2bf   :  { %v1168_v33 = vmul.f32 %v2325_v29, %v1148_v61 }
 0x2c1   :  { %1184 = vadd.xlane.f32.xlu0 %v1168_v33 }
 0x2c2   :  { %v1110_v63 = vpop.f32.mrf.mxu2 }
 0x2c3   :  { %v1111_v1 = vadd.f32 %v1110_v63, %v2322_v57 }
 0x2c5   :  { %v1149_v5 = vmax.f32 %v1111_v1, 0.0 }
 0x2c7   :  { %v1169_v8 = vmul.f32 %v2325_v29, %v1149_v5 }
 0x2c9   :  { %1186 = vadd.xlane.f32.xlu0 %v1169_v8 }
 0x2ca   :  { %v1113_v4 = vpop.f32.mrf.mxu2 }
 0x2cb   :  { %v1114_v9 = vadd.f32 %v1113_v4, %v2322_v57 }
 0x2cd   :  { %v1150_v2 = vmax.f32 %v1114_v9, 0.0 }
 0x2cf   :  { %v1170_v10 = vmul.f32 %v2325_v29, %v1150_v2 }
 0x2d1   :  { %1188 = vadd.xlane.f32.xlu1 %v1170_v10 }
 0x2d2   :  { %v1115_v11 = vpop.f32.mrf.mxu2 }
 0x2d3   :  { %v1116_v6 = vadd.f32 %v1115_v11, %v2322_v57 }
 0x2d5   :  { %v1151_v12 = vmax.f32 %v1116_v6, 0.0 }
 0x2d7   :  { %v1171_v14 = vmul.f32 %v2325_v29, %v1151_v12 }
 0x2d9   :  { %1190 = vadd.xlane.f32.xlu1 %v1171_v14 }
 0x2da   :  { %v1118_v0 = vpop.f32.mrf.mxu2 }
 0x2db   :  { %v1119_v31 = vadd.f32 %v1118_v0, %v2322_v57 }
 0x2dd   :  { %v1152_v15 = vmax.f32 %v1119_v31, 0.0 }
 0x2df   :  { %v1172_v3 = vmul.f32 %v2325_v29, %v1152_v15 }
 0x2e1   :  { %1192 = vadd.xlane.f32.xlu2 %v1172_v3 }
 0x2e2   :  { %v1120_v18 = vpop.f32.mrf.mxu2 }
 0x2e3   :  { %v1121_v13 = vadd.f32 %v1120_v18, %v2322_v57 }
 0x2e5   :  { %v1153_v19 = vmax.f32 %v1121_v13, 0.0 }
 0x2e7   :  { %v1173_v17 = vmul.f32 %v2325_v29, %v1153_v19 }
 0x2e9   :  { %1194 = vadd.xlane.f32.xlu2 %v1173_v17 }
 0x2ea   :  { %v1123_v22 = vpop.f32.mrf.mxu2 }
 0x2eb   :  { %v1124_v23 = vadd.f32 %v1123_v22, %v2322_v57 }
 0x2ed   :  { %v1154_v21 = vmax.f32 %v1124_v23, 0.0 }
 0x2ef   :  { %v1174_v24 = vmul.f32 %v2325_v29, %v1154_v21 }
 0x2f1   :  { %1196 = vadd.xlane.f32.xlu0 %v1174_v24 }
 0x2f2   :  { %v1125_v7 = vpop.f32.mrf.mxu2 }
 0x2f3   :  { %v1126_v26 = vadd.f32 %v1125_v7, %v2322_v57 }
 0x2f5   :  { %v1155_v27 = vmax.f32 %v1126_v26, 0.0 }
 0x2f7   :  { %v1175_v16 = vmul.f32 %v2325_v29, %v1155_v27 }
 0x2f9   :  { %1198 = vadd.xlane.f32.xlu1 %v1175_v16 }
 0x2fa   :  { %v1128_v28 = vpop.f32.mrf.mxu2 }
 0x2fb   :  { %v1129_v30 = vadd.f32 %v1128_v28, %v2322_v57 }
 0x2fd   :  { %v1156_v52 = vmax.f32 %v1129_v30, 0.0 }
 0x2ff   :  { %v1176_v34 = vmul.f32 %v2325_v29, %v1156_v52 }
 0x301   :  { %1200 = vadd.xlane.f32.xlu2 %v1176_v34 }
 0x302   :  { %v1130_v35 = vpop.f32.mrf.mxu2 }
 0x303   :  { %v1131_v56 = vadd.f32 %v1130_v35, %v2322_v57 }
 0x305   :  { %v1157_v36 = vmax.f32 %v1131_v56, 0.0 }
 0x307   :  { %v1177_v37 = vmul.f32 %v2325_v29, %v1157_v36 }
 0x309   :  { %1202 = vadd.xlane.f32.xlu0 %v1177_v37 }
 0x30a   :  { %v1133_v38 = vpop.f32.mrf.mxu2 }
 0x30b   :  { %v1134_v39 = vadd.f32 %v1133_v38, %v2322_v57 }
 0x30d   :  { %v1158_v40 = vmax.f32 %v1134_v39, 0.0 }
 0x30f   :  { %v1178_v41 = vmul.f32 %v2325_v29, %v1158_v40 }
 0x311   :  { %1204 = vadd.xlane.f32.xlu1 %v1178_v41 }
 0x312   :  { %v1135_v42 = vpop.f32.mrf.mxu2 }
 0x313   :  { %v1136_v43 = vadd.f32 %v1135_v42, %v2322_v57 }
 0x315   :  { %v1159_v44 = vmax.f32 %v1136_v43, 0.0 }
 0x317   :  { %v1179_v20 = vmul.f32 %v2325_v29, %v1159_v44 }
 0x319   :  { %1206 = vadd.xlane.f32.xlu2 %v1179_v20 }
 0x31a   :  { %v1138_v45 = vpop.f32.mrf.mxu2 }
 0x31b   :  { %v1139_v25 = vadd.f32 %v1138_v45, %v2322_v57 }
 0x31d   :  { %v1160_v46 = vmax.f32 %v1139_v25, 0.0 }
 0x31f   :  { %v1180_v47 = vmul.f32 %v2325_v29, %v1160_v46 }
 0x321   :  { %1208 = vadd.xlane.f32.xlu0 %v1180_v47 }
 0x322   :  { %v1140_v48 = vpop.f32.mrf.mxu2 }
 0x323   :  { %v1141_v49 = vadd.f32 %v1140_v48, %v2322_v57 }
 0x325   :  { %v1161_v59 = vmax.f32 %v1141_v49, 0.0 }
 0x327   :  { %v1181_v50 = vmul.f32 %v2325_v29, %v1161_v59 }
 0x329   :  { %1210 = vadd.xlane.f32.xlu1 %v1181_v50 }
 0x32a   :  { %v1143_v51 = vpop.f32.mrf.mxu2 }
 0x32b   :  { %v1144_v62 = vadd.f32 %v1143_v51, %v2322_v57 }
 0x32d   :  { %v1162_v53 = vmax.f32 %v1144_v62, 0.0 }
 0x32f   :  { %v1182_v54 = vmul.f32 %v2325_v29, %v1162_v53 }
 0x331   :  { %1212 = vadd.xlane.f32.xlu2 %v1182_v54 }
 0x332   :  { %v1145_v58 = vpop.f32.mrf.mxu2 }
 0x333   :  { %v1146_v60 = vadd.f32 %v1145_v58, %v2322_v57 }
 0x334   :  { %v1185_v61 = vpop.xlane.xlu0 %1184 }
 0x335   :  { %v1163_v33 = vmax.f32 %v1146_v60, 0.0  ;;  %v1217_v63 = vadd.f32 %v1216_v55, %v1185_v61 }
 0x337   :  { %1234 = vst.msk [vmem:[%s2430_s7] sm:$0xff] %vm1233_vm2, %v1217_v63  ;;  %v1183_v1 = vmul.f32 %v2325_v29, %v1163_v33 }
 0x339   :  { %1214 = vadd.xlane.f32.xlu0 %v1183_v1 }
 0x33c   :  { %v1187_v5 = vpop.xlane.xlu0 %1186 }
 0x33d   :  { %v1218_v8 = vadd.f32 %v1216_v55, %v1187_v5 }
 0x33f   :  { %1235 = vst.msk [vmem:[%s2430_s7 + $0x8] sm:$0xff] %vm1233_vm2, %v1218_v8 }
 0x344   :  { %v1189_v32 = vpop.xlane.xlu1 %1188 }
 0x345   :  { %v1219_v57 = vadd.f32 %v1216_v55, %v1189_v32 }
 0x347   :  { %1236 = vst.msk [vmem:[%s2430_s7 + $0x10] sm:$0xff] %vm1233_vm2, %v1219_v57 }
 0x34c   :  { %v1191_v4 = vpop.xlane.xlu1 %1190 }
 0x34d   :  { %v1220_v9 = vadd.f32 %v1216_v55, %v1191_v4 }
 0x34f   :  { %1237 = vst.msk [vmem:[%s2430_s7 + $0x18] sm:$0xff] %vm1233_vm2, %v1220_v9 }
 0x354   :  { %v1193_v29 = vpop.xlane.xlu2 %1192 }
 0x355   :  { %v1221_v2 = vadd.f32 %v1216_v55, %v1193_v29 }
 0x357   :  { %1238 = vst.msk [vmem:[%s2430_s7 + $0x20] sm:$0xff] %vm1233_vm2, %v1221_v2 }
 0x35c   :  { %v1195_v10 = vpop.xlane.xlu2 %1194 }
 0x35d   :  { %v1222_v11 = vadd.f32 %v1216_v55, %v1195_v10 }
 0x35f   :  { %1239 = vst.msk [vmem:[%s2430_s7 + $0x28] sm:$0xff] %vm1233_vm2, %v1222_v11 }
 0x364   :  { %v1197_v6 = vpop.xlane.xlu0 %1196 }
 0x365   :  { %v1223_v12 = vadd.f32 %v1216_v55, %v1197_v6 }
 0x367   :  { %1240 = vst.msk [vmem:[%s2430_s7 + $0x30] sm:$0xff] %vm1233_vm2, %v1223_v12 }
 0x36c   :  { %v1199_v14 = vpop.xlane.xlu1 %1198 }
 0x36d   :  { %v1224_v0 = vadd.f32 %v1216_v55, %v1199_v14 }
 0x36f   :  { %1241 = vst.msk [vmem:[%s2430_s7 + $0x38] sm:$0xff] %vm1233_vm2, %v1224_v0 }
 0x374   :  { %v1201_v31 = vpop.xlane.xlu2 %1200 }
 0x375   :  { %v1225_v15 = vadd.f32 %v1216_v55, %v1201_v31 }
 0x377   :  { %1242 = vst.msk [vmem:[%s2430_s7 + $0x40] sm:$0xff] %vm1233_vm2, %v1225_v15 }
 0x37c   :  { %v1203_v3 = vpop.xlane.xlu0 %1202 }
 0x37d   :  { %v1226_v18 = vadd.f32 %v1216_v55, %v1203_v3 }
 0x37f   :  { %1243 = vst.msk [vmem:[%s2430_s7 + $0x48] sm:$0xff] %vm1233_vm2, %v1226_v18 }
 0x384   :  { %v1205_v13 = vpop.xlane.xlu1 %1204 }
 0x385   :  { %v1227_v19 = vadd.f32 %v1216_v55, %v1205_v13 }
 0x387   :  { %1244 = vst.msk [vmem:[%s2430_s7 + $0x50] sm:$0xff] %vm1233_vm2, %v1227_v19 }
 0x38c   :  { %v1207_v17 = vpop.xlane.xlu2 %1206 }
 0x38d   :  { %v1228_v22 = vadd.f32 %v1216_v55, %v1207_v17 }
 0x38f   :  { %1245 = vst.msk [vmem:[%s2430_s7 + $0x58] sm:$0xff] %vm1233_vm2, %v1228_v22 }
 0x394   :  { %v1209_v23 = vpop.xlane.xlu0 %1208 }
 0x395   :  { %v1229_v21 = vadd.f32 %v1216_v55, %v1209_v23 }
 0x397   :  { %1246 = vst.msk [vmem:[%s2430_s7 + $0x60] sm:$0xff] %vm1233_vm2, %v1229_v21 }
 0x39c   :  { %v1211_v24 = vpop.xlane.xlu1 %1210 }
 0x39d   :  { %v1230_v7 = vadd.f32 %v1216_v55, %v1211_v24 }
 0x39f   :  { %1247 = vst.msk [vmem:[%s2430_s7 + $0x68] sm:$0xff] %vm1233_vm2, %v1230_v7 }
 0x3a4   :  { %v1213_v26 = vpop.xlane.xlu2 %1212 }
 0x3a5   :  { %v1231_v27 = vadd.f32 %v1216_v55, %v1213_v26 }
 0x3a7   :  { %1248 = vst.msk [vmem:[%s2430_s7 + $0x70] sm:$0xff] %vm1233_vm2, %v1231_v27 }
 0x3ac   :  { %v1215_v16 = vpop.xlane.xlu0 %1214 }
 0x3ad   :  { %v1232_v28 = vadd.f32 %v1216_v55, %v1215_v16 }
 0x3af   :  { %1249 = vst.msk [vmem:[%s2430_s7 + $0x78] sm:$0xff] %vm1233_vm2, %v1232_v28 }
 0x3b0   :  { %1254 = vsyncpa [#allocation3], 1 }
 0x3b1   :  { %1255 = vsyncpa [#allocation5], 1 }

</bundles_post_ra>
